<compile_context>
chip_gen: v6e
topology: v6e:2x2x1
jax: 0.10.0
libtpu: 0.0.40
codegen_flags: <defaults>
</compile_context>

<pallas_src>
import jax
import jax.numpy as jnp
from jax.experimental import pallas as pl
from jax.experimental.pallas import tpu as pltpu


def _identity_kernel(x_ref, o_ref):
    # Pure pass-through: load the VMEM tile and store it to the (aliased) output.
    o_ref[...] = x_ref[...]


# dtypes that are safe to re-pack into 32-bit words for the copy.
_PACKABLE = {
    jnp.dtype(t)
    for t in (jnp.bfloat16, jnp.float16, jnp.int8, jnp.uint8, jnp.int16, jnp.uint16)
}

_TARGET_BLOCK_BYTES = 4 * 1024 * 1024      # ~4 MiB per block
_SPLIT_THRESHOLD_BYTES = 2 * 1024 * 1024   # split into >=2 grid steps above this
_MAX_LANES = 128 * 128                     # cap the lane-dense width at 16384


def _pick_tile_rows(rows, row_bytes):
    """Largest row tile that divides `rows`, is a multiple of 8 (or the full
    extent), and keeps one block at <= ~_TARGET_BLOCK_BYTES."""
    if rows <= 1:
        return rows
    target_rows = max(1, _TARGET_BLOCK_BYTES // max(1, row_bytes))
    if rows <= target_rows:
        # Whole row range fits under the byte target in a single block.
        # For non-tiny arrays prefer two grid steps so v7x's two TensorCores
        # can both issue DMAs ("parallel" grid axis).
        if rows * row_bytes >= _SPLIT_THRESHOLD_BYTES and rows % 16 == 0:
            return rows // 2
        return rows
    if rows % 8 != 0:
        # No divisor of `rows` can be a multiple of 8; the only legal block
        # along this axis is the full extent.
        return rows
    start = min(target_rows, rows)
    start -= start % 8
    for cand in range(start, 0, -8):
        if rows % cand == 0:
            return cand
    return rows


def _lane_dense_2d(flat):
    """View a 1-D array as (rows, lanes) with lanes a large multiple of 128."""
    n = flat.shape[0]
    if n % 128 == 0:
        lane = 128
        max_k = min(n // 128, _MAX_LANES // 128)
        for k in range(max_k, 0, -1):
            if n % (128 * k) == 0:
                lane = 128 * k
                break
        return flat.reshape(n // lane, lane)
    # Fallback for element counts not divisible by 128: a single full-extent
    # block is always a legal BlockSpec.  (Only hit for odd-sized inputs.)
    return flat.reshape(1, n)


def same_forward(x):
    """Identity forward pass (PyTorch `Same`) as a Pallas TPU kernel."""
    orig_shape = x.shape
    orig_dtype = x.dtype
    total = x.size

    if total == 0:
        return x  # nothing to copy

    # Pack narrow dtypes into 32-bit words: the identity copy is dtype-agnostic
    # and 32-bit lanes keep the layout simple and lane-dense.
    pack = 1
    work = x
    if jnp.dtype(orig_dtype) in _PACKABLE:
        p = 4 // jnp.dtype(orig_dtype).itemsize
        if total % p == 0:
            pack = p
            work = jax.lax.bitcast_convert_type(
                x.reshape(total // p, p), jnp.uint32
            )

    x2 = _lane_dense_2d(work.reshape(-1))
    R, C = x2.shape
    row_bytes = C * jnp.dtype(x2.dtype).itemsize
    tile_r = _pick_tile_rows(R, row_bytes)
    grid = (R // tile_r,)

    out = pl.pallas_call(
        _identity_kernel,
        out_shape=jax.ShapeDtypeStruct((R, C), x2.dtype),
        grid=grid,
        in_specs=[pl.BlockSpec((tile_r, C), lambda i: (i, 0))],
        out_specs=pl.BlockSpec((tile_r, C), lambda i: (i, 0)),
        # Donate the input buffer as the output: no extra HBM allocation for
        # an op that is f(x) = x.
        input_output_aliases={0: 0},
        compiler_params=pltpu.CompilerParams(
            dimension_semantics=("parallel",),
            vmem_limit_bytes=32 * 1024 * 1024,
        ),
    )(x2)

    if pack > 1:
        out = jax.lax.bitcast_convert_type(
            out.reshape(total // pack), orig_dtype
        )
    return out.reshape(orig_shape)


if __name__ == "__main__":
    key = jax.random.PRNGKey(0)
    # Small NCHW input consistent with a conv-style module.
    x = jax.random.normal(key, (2, 4, 16, 16), dtype=jnp.float32)

    y = same_forward(x)
    y = jax.block_until_ready(y)

    assert y.shape == x.shape, f"shape mismatch: {y.shape} vs {x.shape}"
    assert y.dtype == x.dtype, f"dtype mismatch: {y.dtype} vs {x.dtype}"
    assert bool(jnp.all(y == x)), "identity kernel output differs from input"

    print("KERNEL_OK")
</pallas_src>

<mosaic_0001>
module attributes {stable_mosaic.version = 11 : i64} {
  func.func @_identity_kernel(%arg0: i32, %arg1: memref<1x2048xf32, #tpu.memory_space<vmem>>, %arg2: memref<1x2048xf32, #tpu.memory_space<vmem>>) attributes {dimension_semantics = [#tpu.dimension_semantics<parallel>], iteration_bounds = array<i64: 1>, scalar_prefetch = 0 : i64, scratch_operands = 0 : i64, tpu.core_type = #tpu.core_type<tc>, window_params = [{transform_indices = @transform_0, window_bounds = array<i64: 1, 2048>}, {transform_indices = @transform_1, window_bounds = array<i64: 1, 2048>}]} {
    %c0 = arith.constant 0 : index
    %c0_0 = arith.constant 0 : index
    %0 = vector.load %arg1[%c0, %c0_0] : memref<1x2048xf32, #tpu.memory_space<vmem>>, vector<1x2048xf32>
    %c0_1 = arith.constant 0 : index
    %c0_2 = arith.constant 0 : index
    %1 = vector.load %arg2[%c0_1, %c0_2] : memref<1x2048xf32, #tpu.memory_space<vmem>>, vector<1x2048xf32>
    tpu.vector_store %arg2[%c0_1, %c0_2], %0 {strides = array<i32>} : memref<1x2048xf32, #tpu.memory_space<vmem>>, vector<1x2048xf32>,
    return
  }
  func.func @transform_0(%arg0: i32) -> (i32, i32) {
    %c0_i32 = arith.constant 0 : i32
    %c0_i32_0 = arith.constant 0 : i32
    return %arg0, %c0_i32 : i32, i32
  }
  func.func @transform_1(%arg0: i32) -> (i32, i32) {
    %c0_i32 = arith.constant 0 : i32
    %c0_i32_0 = arith.constant 0 : i32
    return %arg0, %c0_i32 : i32, i32
  }
}

</mosaic_0001>

<bundles_post_ra>
// kernel: tpu_custom_call.1
= control target key start
LH: loop header
LB: loop body
LE: loop exit
PB: predicated region body
PF: predicated region fallthrough
CT: control target
= control target key end

     0   :  { %6 = vsyncpa [#allocation3], 0  ;;  %s104_s0 = inlined_call_operand.hbm [shape: f32[1,2048], index: 0, kind: input, shape index: {}, may-alias: {0,1}]   ;;  %s105_s1 = inlined_call_operand.hbm [shape: f32[1,2048], index: 1, kind: output, shape index: {}, may-alias: {0,1}]  }
   0x1   :  { %7 = vsyncpa [#allocation4], 0  ;;  %s86_s6 = smov [#allocation2]  }
   0x2   :  { %s14_s7 = sshll.u32 %s86_s6, 4  ;;  %s15_s7 = int_to_ptr.vmem [resolvable:$true] %s14_s7 }
   0x3   :  { %s50_s8 = scalar_lea.vmem %s15_s7, 256  ;;  %p55_p1 = scmp.lt.s32.totalorder %s15_s7, %s15_s7 }
   0x4   :  { %p51_p0 = scmp.ne.s32.totalorder %s15_s7, %s50_s8  ;;  %p56_p2 = scmp.lt.s32.totalorder %s50_s8, %s50_s8 }
   0x6   :  { %p57_p3 = por %p56_p2, %p55_p1 }
   0x8   :  { %p58_p4 = pnand %p57_p3, %p51_p0 }
   0xa   :  { %61 = shalt.err (!%p58_p4)
}
   0xb   :  { %17 = dma.hbm_to_vmem [thread:$0]  %s104_s0, 256, %s15_s7, [#allocation3]  }
   0xc   :  { %82 = dma.done.wait [#allocation3], 256  }
   0xd   :  { %83 = vsyncadd [#allocation3], 4294967040  ;;  %s87_s11 = smov [#allocation5]   ;;  %v21_v0 = vld [vmem:[#allocation2] sm:$0xff]  ;;  %v22_v1 = vld [vmem:[#allocation2 + $0x8] sm:$0xff] }
   0xe   :  { %s31_s12 = sshll.u32 %s87_s11, 4  ;;  %23 = vst [vmem:[#allocation5] sm:$0xff] %v21_v0  ;;  %24 = vst [vmem:[#allocation5 + $0x8] sm:$0xff] %v22_v1  ;;  %s32_s12 = int_to_ptr.vmem [resolvable:$true] %s31_s12 }
   0xf   :  { %s62_s13 = scalar_lea.vmem %s32_s12, 256  ;;  %p67_p6 = scmp.lt.s32.totalorder %s32_s12, %s32_s12 }
  0x10   :  { %p63_p5 = scmp.ne.s32.totalorder %s32_s12, %s62_s13  ;;  %p68_p7 = scmp.lt.s32.totalorder %s62_s13, %s62_s13 }
  0x12   :  { %p69_p8 = por %p68_p7, %p67_p6 }
  0x14   :  { %p70_p9 = pnand %p69_p8, %p63_p5 }
  0x16   :  { %73 = shalt.err (!%p70_p9)
}
  0x17   :  { %34 = dma.vmem_to_hbm [thread:$0]  %s32_s12, 256, %s105_s1, [#allocation4]  }
  0x18   :  { %84 = dma.done.wait [#allocation4], 256  }
  0x19   :  { %85 = vsyncadd [#allocation4], 4294967040 }
  0x1a   :  { %38 = vsyncpa [#allocation3], 1 }
  0x1b   :  { %39 = vsyncpa [#allocation4], 1 }

</bundles_post_ra>
